<compile_context>
chip_gen: v5e
topology: v5e:2x2
jax: 0.10.0
libtpu: 0.0.40
codegen_flags: <defaults>
</compile_context>

<pallas_src>
import math

import jax
import jax.numpy as jnp
from jax import lax
from jax.experimental import pallas as pl
from jax.experimental.pallas import tpu as pltpu


def _tile_cap() -> int:
    """Per-generation output tile cap (elements per side)."""
    try:
        kind = jax.devices()[0].device_kind.lower()
    except Exception:
        return 512
    # v7x: ~3.2 TB/s HBM writes a 1 MiB tile in ~0.3 us, comparable to the
    # ~0.35 us per-grid-step overhead -> bigger tiles amortize the fixed cost.
    if "v7" in kind:
        return 1024
    # v5e/v6e: 512x512 f32 output tiles already sit near the write roofline.
    return 512


def _pick_tile(dim: int, cap: int) -> int:
    """Output tile size along one H axis.

    * dim <= cap                      -> full dim (block == array extent, legal).
    * dim % 128 == 0 and dim <= 1024  -> full dim (lane-aligned, no partial edge,
                                         <= 4 MiB f32 tile -> fits scoped VMEM).
    * otherwise                       -> largest multiple of 128 <= cap; the grid
                                         uses pl.cdiv and Pallas masks the
                                         partial edge tile.
    """
    if dim <= cap:
        return dim
    if dim % 128 == 0 and dim <= 1024:
        return dim
    return max(128, (cap // 128) * 128)


def _lora_delta_kernel(a_ref, b_ref, o_ref):
    # a_ref: (1, R, tM)   lane-dense A tile (label-major)
    # b_ref: (1, R, tN)
    # o_ref: (1, tM, tN)
    o_ref[0] = lax.dot_general(
        a_ref[0],
        b_ref[0],
        dimension_numbers=(((0,), (0,)), ((), ())),   # contract over R (A^T @ B)
        preferred_element_type=jnp.float32,           # f32 MXU accumulation
    ).astype(o_ref.dtype)


def lora_delta_label_major(
    dense_a: jax.Array,
    dense_b: jax.Array,
    *,
    out_dtype=jnp.float32,
    tile: int | None = None,
) -> jax.Array:
    """einsum('hrl,ril->lhi'): label-major (L, H, H) output (TPU-friendly layout).

    dense_a: (H, R, L), dense_b: (R, H, L) -> (L, H, H) in `out_dtype`.
    """
    H, R, L = dense_a.shape
    assert dense_b.shape == (R, H, L)

    # Label-major, lane-dense relayouts.  Each touches only H*R*L elements —
    # tiny next to the H*H*L output.
    a_l = jnp.transpose(dense_a, (2, 1, 0))  # (L, R, H): H on lanes -> contiguous DMA
    b_l = jnp.transpose(dense_b, (2, 0, 1))  # (L, R, H)

    cap = _tile_cap()
    tm = tn = int(tile) if tile is not None else _pick_tile(H, cap)

    gi = pl.cdiv(H, tm)
    gj = pl.cdiv(H, tn)
    # Leading grid axis = the large, even i axis (good 2-TC sharding on v7x).
    # j innermost; A's index_map ignores j so its tile stays resident across
    # the whole row of output tiles.
    grid = (gi, L, gj)

    out_itemsize = jnp.dtype(out_dtype).itemsize
    cost = pl.CostEstimate(
        flops=2 * H * H * R * L,
        transcendentals=0,
        bytes_accessed=int(
            4 * H * R * L                 # A: read once per (i, l)
            + 4 * gi * R * H * L          # B: re-read once per i row
            + out_itemsize * H * H * L    # output writes (dominant term)
        ),
    )

    # Double-buffered working set; fits the scoped-VMEM default on all
    # generations, but state the budget explicitly.
    working = 2 * (tm * tn * out_itemsize + 4 * R * (tm + tn))
    vmem_limit = int(min(64 << 20, max(32 << 20, 2 * working)))

    # TODO(synk): on v7x, sweep out_specs pipeline_mode=pl.Buffered(3); keep only
    # if it measurably wins.
    return pl.pallas_call(
        _lora_delta_kernel,
        out_shape=jax.ShapeDtypeStruct((L, H, H), out_dtype),
        grid_spec=pltpu.PrefetchScalarGridSpec(
            num_scalar_prefetch=0,
            grid=grid,
            in_specs=[
                # A tile independent of j -> resident across the j sweep.
                pl.BlockSpec((1, R, tm), lambda i, l, j: (l, 0, i)),
                pl.BlockSpec((1, R, tn), lambda i, l, j: (l, 0, j)),
            ],
            out_specs=pl.BlockSpec((1, tm, tn), lambda i, l, j: (l, i, j)),
        ),
        compiler_params=pltpu.CompilerParams(
            # Every grid step owns a distinct output block -> all axes parallel.
            dimension_semantics=("parallel", "parallel", "parallel"),
            vmem_limit_bytes=vmem_limit,
        ),
        cost_estimate=cost,
    )(a_l, b_l)


def lora_delta(
    dense_a: jax.Array,
    dense_b: jax.Array,
    *,
    force_pallas: bool = False,
    out_dtype=jnp.float32,
) -> jax.Array:
    """PyTorch-compatible forward: einsum('hrl,ril->hil') -> (H, H, L)."""
    H, R, L = dense_a.shape
    assert dense_b.shape == (R, H, L)

    # Tiny problems: XLA's fused einsum beats any kernel (per-grid-step overhead
    # ~0.35us; an R-wide MXU K dim is <4% utilized).
    if not force_pallas and H < 128:
        return jnp.einsum('hrl,ril->hil', dense_a, dense_b).astype(out_dtype)

    out_lhh = lora_delta_label_major(dense_a, dense_b, out_dtype=out_dtype)
    # NOTE: this standalone relayout re-reads + re-writes the whole H*H*L result
    # (~3x the kernel's HBM traffic).  Prefer lora_delta_label_major (L, H, H)
    # when the consumer can accept the label-major layout.
    return jnp.transpose(out_lhh, (1, 2, 0))


def init_params(key, num_labels: int, hidden_size: int, rank: int):
    """Deterministic init mirroring the PyTorch module's __init__."""
    # nn.init.kaiming_uniform_(dense_a, a=sqrt(5)):
    #   fan_in = rank * num_labels; bound = sqrt(1 / fan_in)
    fan_in = rank * num_labels
    bound = math.sqrt(1.0 / fan_in)
    dense_a = jax.random.uniform(
        key, (hidden_size, rank, num_labels),
        dtype=jnp.float32, minval=-bound, maxval=bound,
    )
    # nn.init.zeros_(dense_b)
    dense_b = jnp.zeros((rank, hidden_size, num_labels), dtype=jnp.float32)
    return dense_a, dense_b


if __name__ == "__main__":
    key = jax.random.PRNGKey(0)
    k_a, k_b, k_c, k_d = jax.random.split(key, 4)

    # ---- small config from the module spec (force the Pallas path) ----
    num_labels, hidden_size, rank = 3, 32, 4
    dense_a, dense_b = init_params(k_a, num_labels, hidden_size, rank)

    # Faithful module init (dense_b == 0 -> output all zeros, as in PyTorch).
    out = jax.block_until_ready(lora_delta(dense_a, dense_b, force_pallas=True))
    ref = jnp.einsum('hrl,ril->hil', dense_a, dense_b)
    assert out.shape == (hidden_size, hidden_size, num_labels)
    assert jnp.allclose(out, ref, atol=1e-5), "mismatch vs einsum reference"

    # Non-zero dense_b to exercise the matmul path.
    dense_b_rand = jax.random.normal(
        k_b, (rank, hidden_size, num_labels), dtype=jnp.float32
    )
    out2 = jax.block_until_ready(lora_delta(dense_a, dense_b_rand, force_pallas=True))
    ref2 = jnp.einsum('hrl,ril->hil', dense_a, dense_b_rand)
    assert jnp.allclose(out2, ref2, atol=1e-5, rtol=1e-5), "mismatch (random b)"

    # ---- modest config: H=640 now gets a single full-H (lane-aligned) tile ----
    H2, R2, L2 = 640, 8, 2
    a2 = jax.random.normal(k_c, (H2, R2, L2), dtype=jnp.float32)
    b2 = jax.random.normal(k_d, (R2, H2, L2), dtype=jnp.float32)
    ref3 = jnp.einsum('hrl,ril->hil', a2, b2)

    out3 = jax.block_until_ready(lora_delta(a2, b2))
    assert out3.shape == (H2, H2, L2)
    assert jnp.allclose(out3, ref3, atol=1e-3, rtol=1e-3), "mismatch (full-H tile)"

    # Label-major entry point (the TPU-friendly layout) agrees as well.
    out4 = jax.block_until_ready(lora_delta_label_major(a2, b2))
    assert jnp.allclose(jnp.transpose(out4, (1, 2, 0)), ref3, atol=1e-3, rtol=1e-3)

    # Multi-tile path with a masked partial edge (640 = 512 + 128 under tile=512).
    out5 = jax.block_until_ready(lora_delta_label_major(a2, b2, tile=512))
    assert jnp.allclose(jnp.transpose(out5, (1, 2, 0)), ref3, atol=1e-3, rtol=1e-3), \
        "mismatch (partial edge tiles)"

    print("KERNEL_OK")
</pallas_src>

<mosaic_0001>
module attributes {stable_mosaic.version = 11 : i64} {
  func.func @_lora_delta_kernel(%arg0: i32, %arg1: i32, %arg2: i32, %arg3: memref<1x4x32xf32, #tpu.memory_space<vmem>>, %arg4: memref<1x4x32xf32, #tpu.memory_space<vmem>>, %arg5: memref<1x32x32xf32, #tpu.memory_space<vmem>>) attributes {dimension_semantics = [#tpu.dimension_semantics<parallel>, #tpu.dimension_semantics<parallel>, #tpu.dimension_semantics<parallel>], iteration_bounds = array<i64: 1, 3, 1>, scalar_prefetch = 0 : i64, scratch_operands = 0 : i64, tpu.core_type = #tpu.core_type<tc>, window_params = [{transform_indices = @transform_0, window_bounds = array<i64: 1, 4, 32>}, {transform_indices = @transform_1, window_bounds = array<i64: 1, 4, 32>}, {transform_indices = @transform_2, window_bounds = array<i64: 1, 32, 32>}]} {
    %c0 = arith.constant 0 : index
    %c0_0 = arith.constant 0 : index
    %c0_1 = arith.constant 0 : index
    %0 = vector.load %arg3[%c0, %c0_0, %c0_1] : memref<1x4x32xf32, #tpu.memory_space<vmem>>, vector<1x4x32xf32>
    %1 = vector.shape_cast %0 : vector<1x4x32xf32> to vector<4x32xf32>
    %c0_2 = arith.constant 0 : index
    %c0_3 = arith.constant 0 : index
    %c0_4 = arith.constant 0 : index
    %2 = vector.load %arg4[%c0_2, %c0_3, %c0_4] : memref<1x4x32xf32, #tpu.memory_space<vmem>>, vector<1x4x32xf32>
    %3 = vector.shape_cast %2 : vector<1x4x32xf32> to vector<4x32xf32>
    %cst = arith.constant dense<0.000000e+00> : vector<32x32xf32>
    %4 = tpu.matmul %1, %3, %cst {dimension_numbers = #tpu.dot_dimension_numbers<[0], [0], [1], [1], [0, 1, 1, 1], [], []>} : vector<4x32xf32>, vector<4x32xf32>, vector<32x32xf32> -> vector<32x32xf32>
    %c0_5 = arith.constant 0 : index
    %c0_6 = arith.constant 0 : index
    %c0_7 = arith.constant 0 : index
    %5 = vector.load %arg5[%c0_5, %c0_6, %c0_7] : memref<1x32x32xf32, #tpu.memory_space<vmem>>, vector<1x32x32xf32>
    %6 = vector.shape_cast %5 : vector<1x32x32xf32> to vector<32x32xf32>
    %7 = vector.shape_cast %4 : vector<32x32xf32> to vector<1x32x32xf32>
    tpu.vector_store %arg5[%c0_5, %c0_6, %c0_7], %7 {strides = array<i32>} : memref<1x32x32xf32, #tpu.memory_space<vmem>>, vector<1x32x32xf32>,
    return
  }
  func.func @transform_0(%arg0: i32, %arg1: i32, %arg2: i32) -> (i32, i32, i32) {
    %c0_i32 = arith.constant 0 : i32
    %c0_i32_0 = arith.constant 0 : i32
    return %arg1, %c0_i32, %arg0 : i32, i32, i32
  }
  func.func @transform_1(%arg0: i32, %arg1: i32, %arg2: i32) -> (i32, i32, i32) {
    %c0_i32 = arith.constant 0 : i32
    %c0_i32_0 = arith.constant 0 : i32
    return %arg1, %c0_i32, %arg2 : i32, i32, i32
  }
  func.func @transform_2(%arg0: i32, %arg1: i32, %arg2: i32) -> (i32, i32, i32) {
    %c0_i32 = arith.constant 0 : i32
    return %arg1, %arg0, %arg2 : i32, i32, i32
  }
}

</mosaic_0001>

<bundles_post_ra>
// kernel: tpu_custom_call.1
= control target key start
LH: loop header
LB: loop body
LE: loop exit
PB: predicated region body
PF: predicated region fallthrough
CT: control target
= control target key end

     0   :  { %7 = vsyncpa [#allocation3], 0  ;;  %s835_s0 = inlined_call_operand.hbm [shape: f32[3,4,32], index: 0, kind: input, shape index: {}]   ;;  %s836_s1 = inlined_call_operand.hbm [shape: f32[3,4,32], index: 1, kind: input, shape index: {}]   ;;  %s837_s2 = inlined_call_operand.hbm [shape: f32[3,32,32], index: 2, kind: output, shape index: {}]  }
   0x1   :  { %9 = vsyncpa [#allocation3 + $0x1], 0 }
   0x2   :  { %10 = vsyncpa [#allocation6], 0 }
   0x3   :  { %12 = vsyncpa [#allocation6 + $0x1], 0 }
   0x4   :  { %13 = vsyncpa [#allocation4], 0 }
   0x5   :  { %15 = vsyncpa [#allocation4 + $0x1], 0  ;;  %s708_s9 = smov 0   ;;  %s710_s10 = smov 0  }
   0x6   :  { %s712_s11 = smov 0   ;;  %s714_s12 = smov 0  }
   0x7   :  { %s716_s13 = smov 0   ;;  %s718_s14 = smov 0  }
   0x8 LB: > { %s447_s15 = sadd.s32 4294967295, %s689_s14   ;;  %s448_s16 = sadd.s32 4294967294, %s689_s14   ;;  %s689_s14 = sphi %s718_s14, %s21_s14   ;;  %s685_s13 = sphi %s716_s13, %s846_s13   ;;  %s681_s12 = sphi %s714_s12, %s845_s12   ;;  %s677_s11 = sphi %s712_s11, %s844_s11   ;;  %s673_s10 = sphi %s710_s10, %s843_s10   ;;  %s669_s9 = sphi %s708_s9, %s842_s9  }
   0x9   : > { %s36_s17 = sadd.s32 1, %s685_s13  ;;  %s49_s18 = sadd.s32 1, %s677_s11 }
   0xa   : > { %p38_p0 = scmp.ge.s32.totalorder %s36_s17, 3  ;;  %p56_p1 = scmp.ne.s32.totalorder %s677_s11, %s673_s10 }
   0xb   : > { %p57_p2 = scmp.eq.s32.totalorder %s689_s14, 0  ;;  %p62_p3 = scmp.ne.s32.totalorder %s673_s10, %s669_s9 }
   0xc   : > { %s848_s17 = smov (%p38_p0, %s36_s17), 0  ;;  %p63_p5 = scmp.eq.s32.totalorder %s447_s15, 0 }
   0xd   : > { %p749_p4 = por %p57_p2, %p56_p1  ;;  %s44_s20 = ssub.s32 %s685_s13, %s848_s17 }
   0xe   : > { %p118_p6 = scmp.eq.s32.totalorder %s447_s15, 2  ;;  %p47_p7 = scmp.eq.s32.totalorder %s44_s20, 0 }
   0xf   : > { %p755_p8 = por %p63_p5, %p62_p3  ;;  %p124_p10 = scmp.eq.s32.totalorder %s448_s16, 2 }
  0x10   : > { %p759_p9 = por %p118_p6, %p56_p1  ;;  %p490_p12 = scmp.lt.s32.totalorder %s689_s14, 3 }
  0x11   : > { %s764_s23 = scalar_select %p47_p7, %s677_s11, %s49_s18  }
  0x12   : > { %p766_p11 = por %p124_p10, %p62_p3  ;;  %s144_s25 = sand.u32 1, %s677_s11  }
  0x13   : > { %s451_s26 = sshll.u32 %s144_s25, 2  ;;  %s452_s27 = sshll.u32 %s685_s13, 2 }
  0x14   : > { %s153_s30 = scalar_lea.hbm %s835_s0, %s452_s27  ;;  %s148_s3 = scalar_lea.vmem [#allocation2], %s451_s26 }
  0x15   : > { %s157_s4 = sshll.u32 %s148_s3, 4  ;;  %s155_s5 = sshll.u32 %s153_s30, 4  ;;  %s158_s4 = int_to_ptr.vmem [resolvable:$true] %s157_s4  ;;  %s156_s5 = int_to_ptr.hbm [resolvable:$true] %s155_s5 }
  0x16   : > { %p480_p13 = pnand %p490_p12, %p749_p4  ;;  %p455_p0 = scmp.ge.s32.totalorder %s689_s14, 1 }
  0x17   : > { %p182_p1 = scmp.lt.s32.totalorder %s689_s14, 4  ;;  %s145_s6 = scalar_lea.sflag [#allocation3], %s144_s25 }
  0x18   : > { %482 = dma.hbm_to_vmem [thread:$0]  (!%p480_p13), %s156_s5, 64, %s158_s4, %s145_s6  }
  0x19   : > { %p183_p2 = pnand %p455_p0, %p182_p1  ;;  %s173_s15 = scalar_lea.hbm %s836_s1, %s452_s27 }
  0x1a   : > { %s168_s16 = scalar_lea.vmem [#allocation5], %s451_s26  ;;  %s175_s20 = sshll.u32 %s173_s15, 4  ;;  %s176_s20 = int_to_ptr.hbm [resolvable:$true] %s175_s20 }
  0x1b   : > { %s177_s18 = sshll.u32 %s168_s16, 4  ;;  %s165_s28 = scalar_lea.sflag [#allocation6], %s144_s25  ;;  %s178_s18 = int_to_ptr.vmem [resolvable:$true] %s177_s18 }
  0x1c   : > { %485 = dma.hbm_to_vmem [thread:$0]  (!%p480_p13), %s176_s20, 64, %s178_s18, %s165_s28  }
  0x1d   : > { %186 = sbr.rel (%p183_p2) target bundleno = 363 (0x16b), region = 28  ;;  %s784_s19 = sand.u32 (!%p183_p2), 1, %s673_s10  }
  0x1e   : > { %s456_s29 = sshll.u32 (!%p183_p2), %s784_s19, 2  ;;  %s189_s30 = scalar_lea.sflag (!%p183_p2), [#allocation3], %s784_s19 }
  0x1f   : > { %s192_s3 = scalar_lea.vmem (!%p183_p2), [#allocation2], %s456_s29 }
  0x22   : > { %656 = dma.done.wait (%p755_p8), %s189_s30, 64  }
  0x23   : > { %658 = vsyncadd (%p755_p8), %s189_s30, 4294967232  ;;  %s199_s26 = scalar_lea.sflag [#allocation6], %s784_s19  ;;  %s202_s25 = scalar_lea.vmem [#allocation5], %s456_s29 }
  0x24   : > { %660 = dma.done.wait (%p755_p8), %s199_s26, 64  }
  0x25   : > { %662 = vsyncadd (%p755_p8), %s199_s26, 4294967232  ;;  %vm277_vm0 = vcmask 1043456   ;;  %v230_v0 = vld [vmem:[%s192_s3] sm:$0xf]  ;;  %v231_v1 = vld [vmem:[%s202_s25] sm:$0xf] }
  0x26   : > { %232 = vxpose.xlu0.b32.start.end [1/1] (short) (narrow) %v230_v0, 32  ;;  %459 = vmatpush.msk.msra.mxu0 %vm277_vm0, %v231_v1  ;;  %vm264_vm1 = vcmask 31744   ;;  %s458_s21 = sshll.u32 %s784_s19, 5  ;;  %vm310_vm2 = vcmask 261120   ;;  %s469_s4 = sshll.u32 %s681_s12, 5 }
  0x27   : > { %470 = vmatpush.msk.msra.mxu1 %vm277_vm0, %v231_v1  ;;  %471 = vmatpush.msk.msra.mxu2 %vm277_vm0, %v231_v1  ;;  %s228_s27 = scalar_lea.vmem [#allocation7], %s458_s21  ;;  %s330_s7 = scalar_lea.hbm %s837_s2, %s469_s4 }
  0x28   : > { %472 = vmatpush.msk.msra.mxu3 %vm277_vm0, %v231_v1  ;;  %s331_s8 = sshll.u32 %s228_s27, 4  ;;  %s333_s15 = sshll.u32 %s330_s7, 4  ;;  %s332_s8 = int_to_ptr.vmem [resolvable:$true] %s331_s8  ;;  %s334_s15 = int_to_ptr.hbm [resolvable:$true] %s333_s15 }
  0x29   : > { %s316_s16 = scalar_lea.sflag [#allocation4], %s784_s19  ;;  %s617_s18 = sshra.s32 %s334_s15, 4  ;;  %s618_s18 = int_to_ptr.hbm [resolvable:$true] %s617_s18 }
  0x2a   : > { %s619_s20 = scalar_lea.hbm %s618_s18, 32  ;;  %s623_s29 = scalar_lea.hbm %s837_s2, 96 }
  0x2b   : > { %p620_p3 = scmp.ne.s32.totalorder %s618_s18, %s619_s20  ;;  %p624_p6 = scmp.lt.s32.totalorder %s618_s18, %s837_s2 }
  0x2c   : > { %p625_p7 = scmp.lt.s32.totalorder %s623_s29, %s619_s20 }
  0x2d   : > { %p621_p4 = pnand %p620_p3, %p759_p9 }
  0x2e   : > { %p626_p8 = por %p625_p7, %p624_p6 }
  0x2f   : > { %p622_p5 = pneg %p621_p4 }
  0x31   : > { %p627_p10 = pnand %p626_p8, %p622_p5 }
  0xca   : > { %v248_v2 = vpop.trf.xlu0 }
  0xcb   : > { %460 = vmatmul.msk.f32.vlgmr.msra.gmra.mxu0 %vm264_vm1, %v248_v2 }
  0xd2   : > { %v249_v3 = vpop.trf.xlu0 }
  0xd3   : > { %461 = vmatmul.msk.f32.vlgmr.msra.gmra.mxu1 %vm264_vm1, %v249_v3 }
  0xda   : > { %v250_v4 = vpop.trf.xlu0 }
  0xdb   : > { %462 = vmatmul.msk.f32.vlgmr.msra.gmra.mxu2 %vm264_vm1, %v250_v4 }
  0xe2   : > { %v251_v5 = vpop.trf.xlu0 }
  0xe3   : > { %463 = vmatmul.msk.f32.vlgmr.msra.gmra.mxu3 %vm264_vm1, %v251_v5 }
 0x148   : > { %v298_v6 = vpop.f32.mrf.mxu0 }
 0x149   : > { %311 = vst.msk [vmem:[%s228_s27] sm:$0xff] %vm310_vm2, %v298_v6 }
 0x150   : > { %v301_v7 = vpop.f32.mrf.mxu1 }
 0x151   : > { %312 = vst.msk [vmem:[%s228_s27 + $0x8] sm:$0xff] %vm310_vm2, %v301_v7 }
 0x15e   : > { %v304_v8 = vpop.f32.mrf.mxu2 }
 0x15f   : > { %313 = vst.msk [vmem:[%s228_s27 + $0x10] sm:$0xff] %vm310_vm2, %v304_v8 }
 0x166   : > { %v307_v9 = vpop.f32.mrf.mxu3 }
 0x167   : > { %314 = vst.msk [vmem:[%s228_s27 + $0x18] sm:$0xff] %vm310_vm2, %v307_v9 }
 0x168   : > { %630 = shalt.err (!%p627_p10)
}
 0x169   : > { %s691_s19 = smov 128   ;;  %s692_s26 = smov 8  }
 0x16a   : > { %477 = dma.vmem_to_hbm [thread:$0]  (%p759_p9), %s332_s8, 512, %s334_s15, %s316_s16, %s691_s19, %s691_s19, %s692_s26  }
 0x16b PF: > { %p491_p12 = scmp.ge.s32.totalorder %s689_s14, 2  ;;  %s348_s25 = sand.u32 1, %s669_s9  }
 0x16c   : > { %s349_s21 = scalar_lea.sflag [#allocation4], %s348_s25 }
 0x16d   : > { %p487_p13 = pnand %p491_p12, %p766_p11 }
 0x16f   : > { %p488_p0 = pneg %p487_p13 }
 0x171   : > { %664 = dma.done.wait (%p488_p0), %s349_s21, 512  }
 0x172   : > { %666 = vsyncadd (%p488_p0), %s349_s21, 4294966784  ;;  %s21_s14 = sadd.s32 1, %s689_s14   ;;  %s842_s9 = smov %s673_s10 }
 0x173   : > { %p18_p1 = scmp.ge.s32.totalorder %s21_s14, 5   ;;  %s843_s10 = smov %s677_s11 }
 0x174   : > { %s844_s11 = smov %s764_s23  ;;  %s845_s12 = smov %s685_s13 }
 0x175   : > { %s846_s13 = smov %s848_s17  ;;  %20 = sbr.rel (!%p18_p1) target bundleno = 8 (0x8), region = 86 }
 0x17a   :  { %355 = vsyncpa [#allocation3], 1 }
 0x17b   :  { %357 = vsyncpa [#allocation3 + $0x1], 1 }
 0x17c   :  { %358 = vsyncpa [#allocation6], 1 }
 0x17d   :  { %360 = vsyncpa [#allocation6 + $0x1], 1 }
 0x17e   :  { %361 = vsyncpa [#allocation4], 1 }
 0x17f   :  { %363 = vsyncpa [#allocation4 + $0x1], 1 }

</bundles_post_ra>
